<compile_context>
chip_gen: v6e
topology: v6e:2x2x1
jax: 0.10.0
libtpu: 0.0.40
codegen_flags: <defaults>
</compile_context>

<pallas_src>
import functools
import math

import numpy as np
import jax
import jax.numpy as jnp
from jax import lax
from jax.experimental import pallas as pl
from jax.experimental.pallas import tpu as pltpu

# ---------------------------------------------------------------- constants
PHI = (1.0 + math.sqrt(5.0)) / 2.0
PI = math.pi
INV_12 = 1.0 / 12.0
INV_137 = 1.0 / 137.0

# ------------------------------------------------- scaled-down configuration
B = 2                    # batch
IN_CH = 3                # RGB
IMG_HW = 16              # stand-in for 224x224
FEAT = 32                # stand-in for resnet50 fc.in_features (2048)
HID1 = int(FEAT * PHI)   # custom fc hidden (51)
NUM_CLASSES = 10
Z_CH = 128               # latent channels (hard-coded in forward)
GEN_MID = 64
BN_EPS = 1e-5

K_IM2COL = 9 * IN_CH     # 27 conv taps
K_PAD = 32               # patches lane width (27 taps + ones column + pad)
FEAT_PAD = 128
HID_PAD = 128
G1_OUT = GEN_MID * 4     # 256  (64ch x 2x2)
GEN_OUT = 3 * 4 * 4      # 48   (3ch x 4x4)

# fused block-diagonal stage widths
A_IN = FEAT_PAD + Z_CH   # 256 : [pooled | z]
A_OUT = HID_PAD + G1_OUT  # 384 : [h1 | g1]
B_OUT = FEAT_PAD + 128   # 256 : [feats(10,pad128) | synth(48,pad128)]

# single bf16 weight-slab layout (row offsets are multiples of 16 -> clean
# bf16 sublane-packed slicing); lane width 384 = 3*128 (lane-dense)
ROW_CONV = 0                  # 32 rows : folded conv W+b, cols [0:128)
ROW_WA = 32                   # 256 rows: blockdiag(fc1, gen1)+bias row, cols [0:384)
ROW_WB = ROW_WA + A_IN        # 288; 384 rows: blockdiag(fc2, gen2)+bias row, cols [0:256)
SLAB_ROWS = ROW_WB + A_OUT    # 672
SLAB_COLS = A_OUT             # 384

ONES_FEAT_LANE = FEAT         # 32 : pooled lane holding constant 1 (stage-A bias)
ONES_HID_LANE = HID1          # 51 : h1 lane holding constant 1 (stage-B bias)
SCORE_LANE = 127              # spare padded feature lane used to return the score

IMAGENET_MEAN = jnp.array([0.485, 0.456, 0.406], dtype=jnp.float32)


# ================================================================= kernel ==
def _fused_forward_kernel(patches_ref, z_ref, w_ref, out_ref, *,
                          inv_hw, inv_12, score_scale):
    f32 = jnp.float32
    bf16 = jnp.bfloat16

    # -- backbone: normalize+bias-folded 3x3 conv as one im2col matmul + ReLU
    cw = w_ref[ROW_CONV:ROW_CONV + K_PAD, 0:FEAT_PAD]              # (32,128) bf16
    conv = jnp.dot(patches_ref[...], cw, preferred_element_type=f32)
    conv = jnp.maximum(conv, 0.0)                                   # (B*H*W, 128)

    # -- global average pool on the VPU/XLU (no MXU pooling matrix) ---------
    pooled = jnp.sum(conv.reshape(B, IMG_HW * IMG_HW, FEAT_PAD), axis=1) * inv_hw
    # pooled[:, ONES_FEAT_LANE] == 1.0 by construction (carries stage-A bias)

    # -- stage A: [h1 | g1] = ReLU([pooled | z] @ blockdiag(fc1_w, gen1_w)) --
    hin = jnp.concatenate([pooled, z_ref[...]], axis=-1).astype(bf16)   # (B,256)
    wa = w_ref[ROW_WA:ROW_WA + A_IN, :]                             # (256,384) bf16
    h = jnp.maximum(jnp.dot(hin, wa, preferred_element_type=f32), 0.0)  # (B,384)
    # h[:, ONES_HID_LANE] == 1.0 by construction (carries stage-B bias)

    # -- stage B: [feats | g2] = [h1 | g1] @ blockdiag(fc2_w, gen2_w) --------
    wb = w_ref[ROW_WB:ROW_WB + A_OUT, 0:B_OUT]                      # (384,256) bf16
    fused = jnp.dot(h.astype(bf16), wb, preferred_element_type=f32)  # (B,256)

    feats = fused[:, 0:FEAT_PAD]          # cols >= NUM_CLASSES are exactly 0
    synth = fused[:, FEAT_PAD:B_OUT]      # cols >= GEN_OUT are exactly 0

    # -- eval_score = MSE(f, f/137) = (1-1/137)^2 * mean(f^2); adjust feats --
    score = jnp.sum(feats * feats) * score_scale
    feats = feats - score * inv_12
    # Stash the scalar score in the unused padded lane SCORE_LANE: no extra
    # output buffer / DMA.  (Padded feature lanes otherwise hold -score/12;
    # the wrapper slices the real columns back out.)
    lane = lax.broadcasted_iota(jnp.int32, feats.shape, 1)
    feats = jnp.where(lane == SCORE_LANE, score, feats)

    # single lane-dense output slab: two unmasked 128-lane stores
    out_ref[:, 0:FEAT_PAD] = feats
    out_ref[:, FEAT_PAD:B_OUT] = jnp.tanh(synth)


# ================================================================ wrapper ==
def pallas_fused_forward(patches, z, wslab):
    kern = functools.partial(
        _fused_forward_kernel,
        inv_hw=1.0 / (IMG_HW * IMG_HW),
        inv_12=INV_12,
        score_scale=(1.0 - INV_137) ** 2 / (B * NUM_CLASSES))
    return pl.pallas_call(
        kern,
        out_shape=jax.ShapeDtypeStruct((B, B_OUT), jnp.float32),
        in_specs=[pl.BlockSpec(memory_space=pltpu.MemorySpace.VMEM)] * 3,
        out_specs=pl.BlockSpec(memory_space=pltpu.MemorySpace.VMEM),
    )(patches, z, wslab)


# ============================================================= parameters ==
def init_params(key):
    ks = jax.random.split(key, 10)

    def rnd(k, shape, scale=0.05):
        return np.asarray(scale * jax.random.normal(k, shape), dtype=np.float32)

    mean = np.array([0.485, 0.456, 0.406], np.float32)
    std = np.array([0.229, 0.224, 0.225], np.float32)

    # --- backbone stand-in conv3x3 (torch layout out,in,kh,kw); fold the
    #     ImageNet normalize into the weights (border is mean-padded) --------
    conv_w = rnd(ks[0], (FEAT, IN_CH, 3, 3))
    conv_b = rnd(ks[1], (FEAT,))
    w_mat = conv_w.transpose(2, 3, 1, 0).reshape(K_IM2COL, FEAT)   # row=(kh,kw,ci)
    w_fold = w_mat * np.tile(1.0 / std, 9)[:, None]
    b_fold = conv_b - np.tile(mean, 9) @ w_fold

    fc1_w = rnd(ks[2], (FEAT, HID1))
    fc1_b = rnd(ks[3], (HID1,))
    fc2_w = rnd(ks[4], (HID1, NUM_CLASSES))
    fc2_b = rnd(ks[5], (NUM_CLASSES,))

    # --- generator --------------------------------------------------------
    # ConvTranspose2d(128,64,4,2,1) on 1x1 input -> 2x2 hits taps kh,kw in {1,2};
    # eval-mode BatchNorm2d(64) with fresh stats folds to scale 1/sqrt(1+eps).
    g1_w = rnd(ks[6], (Z_CH, GEN_MID, 4, 4))
    g1_b = rnd(ks[7], (GEN_MID,))
    bn_scale = 1.0 / math.sqrt(1.0 + BN_EPS)
    g1_mat = g1_w[:, :, 1:3, 1:3].reshape(Z_CH, G1_OUT) * bn_scale  # cols=(co,oh,ow)
    g1_bias = np.repeat(g1_b, 4) * bn_scale                          # (256,)

    # ConvTranspose2d(64,3,4,2,1) on 2x2 -> 4x4 as a dense (256,48) matrix:
    # rows = (ci, ih, iw), cols = (co, oh, ow)
    g2_w = rnd(ks[8], (GEN_MID, 3, 4, 4))
    g2_b = rnd(ks[9], (3,))
    m2 = np.zeros((G1_OUT, GEN_OUT), np.float32)
    for ci in range(GEN_MID):
        for ih in range(2):
            for iw in range(2):
                for co in range(3):
                    for oh in range(4):
                        for ow in range(4):
                            kh = oh + 1 - 2 * ih
                            kw = ow + 1 - 2 * iw
                            if 0 <= kh < 4 and 0 <= kw < 4:
                                m2[ci * 4 + ih * 2 + iw,
                                   co * 16 + oh * 4 + ow] = g2_w[ci, co, kh, kw]
    g2_bias = np.repeat(g2_b, 16)                                    # (48,)

    # --- pack EVERYTHING into one lane-dense bf16 slab (single weight DMA) --
    slab = np.zeros((SLAB_ROWS, SLAB_COLS), np.float32)
    # conv block: rows 0..26 folded weights, row 27 folded bias (driven by the
    # patches' ones column).  Element [27, ONES_FEAT_LANE] = 1 makes the GAP
    # emit a constant-1 pooled lane that carries the stage-A biases.
    slab[ROW_CONV:ROW_CONV + K_IM2COL, :FEAT] = w_fold
    slab[ROW_CONV + K_IM2COL, :FEAT] = b_fold
    slab[ROW_CONV + K_IM2COL, ONES_FEAT_LANE] = 1.0
    # stage A = blockdiag(fc1_w, gen1) with biases in row ONES_FEAT_LANE
    slab[ROW_WA:ROW_WA + FEAT, :HID1] = fc1_w
    slab[ROW_WA + ONES_FEAT_LANE, :HID1] = fc1_b
    slab[ROW_WA + ONES_FEAT_LANE, ONES_HID_LANE] = 1.0   # propagate ones lane
    slab[ROW_WA + ONES_FEAT_LANE, HID_PAD:] = g1_bias
    slab[ROW_WA + FEAT_PAD:ROW_WA + A_IN, HID_PAD:] = g1_mat
    # stage B = blockdiag(fc2_w, gen2) with biases in row ONES_HID_LANE
    slab[ROW_WB:ROW_WB + HID1, :NUM_CLASSES] = fc2_w
    slab[ROW_WB + ONES_HID_LANE, :NUM_CLASSES] = fc2_b
    slab[ROW_WB + ONES_HID_LANE, FEAT_PAD:FEAT_PAD + GEN_OUT] = g2_bias
    slab[ROW_WB + HID_PAD:ROW_WB + A_OUT, FEAT_PAD:FEAT_PAD + GEN_OUT] = m2

    # TODO(synk): conceptual_branch (Linear 512->int(512*PI)->512) and
    # pi_weight are dead code for concept=None and are not exercised.
    return jnp.asarray(slab, dtype=jnp.bfloat16)


# ================================================================ forward ==
@jax.jit
def forward(wslab, x_nchw, z_key):
    b = x_nchw.shape[0]

    # -- preprocess: Resize (plain JAX glue).  Normalize is folded into the
    #    conv weights; the border is padded with the channel mean so the fold
    #    is exact (mean-padded raw image == zero-padded normalized image). ---
    x_r = jax.image.resize(x_nchw, (b, IN_CH, IMG_HW, IMG_HW), method="bilinear")
    x_nhwc = jnp.transpose(x_r, (0, 2, 3, 1))                   # NCHW -> NHWC
    canvas = jnp.tile(IMAGENET_MEAN.reshape(1, 1, 1, IN_CH),
                      (b, IMG_HW + 2, IMG_HW + 2, 1))
    xp = canvas.at[:, 1:-1, 1:-1, :].set(x_nhwc)

    # -- im2col patches + ones column (carries the conv bias), bf16 ----------
    # TODO(synk): move in-kernel (9 shifted matmuls from a VMEM-resident
    # padded block) when scaling to real 224x224 shapes.
    taps = [xp[:, dh:dh + IMG_HW, dw:dw + IMG_HW, :]
            for dh in range(3) for dw in range(3)]
    patches = jnp.stack(taps, axis=3).reshape(b * IMG_HW * IMG_HW, K_IM2COL)
    patches = jnp.concatenate(
        [patches, jnp.ones((b * IMG_HW * IMG_HW, 1), jnp.float32)], axis=1)
    patches = jnp.pad(patches, ((0, 0), (0, K_PAD - K_IM2COL - 1)))
    patches = patches.astype(jnp.bfloat16)                      # (512, 32)

    # -- latent z ~ N(0,1)  (torch.randn(B, 128, 1, 1) flattened) ------------
    z = jax.random.normal(z_key, (b, Z_CH), dtype=jnp.float32)

    # -- single fused kernel: backbone + eval_score/adjust + generator -------
    out = pallas_fused_forward(patches, z, wslab)               # (B, 256) f32

    features = out[:, :NUM_CLASSES]
    synthetic_images = out[:, FEAT_PAD:FEAT_PAD + GEN_OUT].reshape(b, 3, 4, 4)
    eval_score = out[0, SCORE_LANE]
    return features, synthetic_images, eval_score


# =================================================================== main ==
if __name__ == "__main__":
    root = jax.random.PRNGKey(0)
    k_x, k_z, k_p = jax.random.split(root, 3)

    wslab = init_params(k_p)
    x = jax.random.normal(k_x, (B, IN_CH, IMG_HW, IMG_HW), dtype=jnp.float32)

    feats, synth, score = forward(wslab, x, k_z)
    jax.block_until_ready((feats, synth, score))

    assert feats.shape == (B, NUM_CLASSES)
    assert synth.shape == (B, 3, 4, 4)
    assert score.shape == ()
    print("KERNEL_OK")
</pallas_src>

<mosaic_0001>
module attributes {stable_mosaic.version = 11 : i64} {
  func.func @_fused_forward_kernel(%arg0: memref<512x32xbf16, #tpu.memory_space<vmem>>, %arg1: memref<2x128xf32, #tpu.memory_space<vmem>>, %arg2: memref<672x384xbf16, #tpu.memory_space<vmem>>, %arg3: memref<2x256xf32, #tpu.memory_space<vmem>>) attributes {dimension_semantics = [], scalar_prefetch = 0 : i64, scratch_operands = 0 : i64, tpu.core_type = #tpu.core_type<tc>} {
    %c0 = arith.constant 0 : index
    %c0_0 = arith.constant 0 : index
    %0 = vector.load %arg2[%c0, %c0_0] : memref<672x384xbf16, #tpu.memory_space<vmem>>, vector<32x128xbf16>
    %c0_1 = arith.constant 0 : index
    %c0_2 = arith.constant 0 : index
    %1 = vector.load %arg0[%c0_1, %c0_2] : memref<512x32xbf16, #tpu.memory_space<vmem>>, vector<512x32xbf16>
    %cst = arith.constant dense<0.000000e+00> : vector<512x128xf32>
    %2 = tpu.matmul %1, %0, %cst {dimension_numbers = #tpu.dot_dimension_numbers<[1], [0], [0], [1], [0, 0, 1, 1], [], []>} : vector<512x32xbf16>, vector<32x128xbf16>, vector<512x128xf32> -> vector<512x128xf32>
    %cst_3 = arith.constant 0.000000e+00 : f32
    %3 = vector.broadcast %cst_3 : f32 to vector<512x128xf32>
    %4 = arith.maximumf %2, %3 : vector<512x128xf32>
    %5 = vector.shape_cast %4 : vector<512x128xf32> to vector<2x256x128xf32>
    %cst_4 = arith.constant dense<0.000000e+00> : vector<2x128xf32>
    %6 = vector.multi_reduction <add>, %5, %cst_4 [1] : vector<2x256x128xf32> to vector<2x128xf32>
    %cst_5 = arith.constant 3.906250e-03 : f32
    %7 = vector.broadcast %cst_5 : f32 to vector<2x128xf32>
    %8 = arith.mulf %6, %7 : vector<2x128xf32>
    %c0_6 = arith.constant 0 : index
    %c0_7 = arith.constant 0 : index
    %9 = vector.load %arg1[%c0_6, %c0_7] : memref<2x128xf32, #tpu.memory_space<vmem>>, vector<2x128xf32>
    %10 = tpu.concatenate %8, %9 in 1 : vector<2x128xf32>, vector<2x128xf32> -> vector<2x256xf32>
    %11 = arith.truncf %10 : vector<2x256xf32> to vector<2x256xbf16>
    %c32 = arith.constant 32 : index
    %c0_8 = arith.constant 0 : index
    %12 = vector.load %arg2[%c32, %c0_8] : memref<672x384xbf16, #tpu.memory_space<vmem>>, vector<256x384xbf16>
    %cst_9 = arith.constant dense<0.000000e+00> : vector<2x384xf32>
    %13 = tpu.matmul %11, %12, %cst_9 {dimension_numbers = #tpu.dot_dimension_numbers<[1], [0], [0], [1], [0, 0, 1, 1], [], []>} : vector<2x256xbf16>, vector<256x384xbf16>, vector<2x384xf32> -> vector<2x384xf32>
    %cst_10 = arith.constant 0.000000e+00 : f32
    %14 = vector.broadcast %cst_10 : f32 to vector<2x384xf32>
    %15 = arith.maximumf %13, %14 : vector<2x384xf32>
    %c288 = arith.constant 288 : index
    %c0_11 = arith.constant 0 : index
    %16 = vector.load %arg2[%c288, %c0_11] : memref<672x384xbf16, #tpu.memory_space<vmem>>, vector<384x256xbf16>
    %17 = arith.truncf %15 : vector<2x384xf32> to vector<2x384xbf16>
    %cst_12 = arith.constant dense<0.000000e+00> : vector<2x256xf32>
    %18 = tpu.matmul %17, %16, %cst_12 {dimension_numbers = #tpu.dot_dimension_numbers<[1], [0], [0], [1], [0, 0, 1, 1], [], []>} : vector<2x384xbf16>, vector<384x256xbf16>, vector<2x256xf32> -> vector<2x256xf32>
    %19 = vector.extract_strided_slice %18 {offsets = [0, 0], sizes = [2, 128], strides = [1, 1]} : vector<2x256xf32> to vector<2x128xf32>
    %20 = vector.extract_strided_slice %18 {offsets = [0, 128], sizes = [2, 128], strides = [1, 1]} : vector<2x256xf32> to vector<2x128xf32>
    %21 = arith.mulf %19, %19 : vector<2x128xf32>
    %22 = vector.shape_cast %21 : vector<2x128xf32> to vector<1x2x128xf32>
    %cst_13 = arith.constant dense<0.000000e+00> : vector<1xf32>
    %23 = vector.multi_reduction <add>, %22, %cst_13 [1, 2] : vector<1x2x128xf32> to vector<1xf32>
    %24 = vector.shape_cast %23 : vector<1xf32> to vector<1x1x1xf32>
    %25 = vector.extract %24[0, 0, 0] : f32 from vector<1x1x1xf32>
    %cst_14 = arith.constant 0.0492727384 : f32
    %26 = arith.mulf %25, %cst_14 : f32
    %cst_15 = arith.constant 0.0833333358 : f32
    %27 = arith.mulf %26, %cst_15 : f32
    %28 = vector.broadcast %27 : f32 to vector<2x128xf32>
    %29 = arith.subf %19, %28 : vector<2x128xf32>
    %30 = tpu.iota {dimensions = array<i32: 1>} : vector<2x128xi32>
    %c127_i32 = arith.constant 127 : i32
    %31 = vector.broadcast %c127_i32 : i32 to vector<2x128xi32>
    %32 = arith.cmpi eq, %30, %31 : vector<2x128xi32>
    %33 = vector.broadcast %26 : f32 to vector<2x128xf32>
    %34 = arith.select %32, %33, %29 : vector<2x128xi1>, vector<2x128xf32>
    %c0_16 = arith.constant 0 : index
    %c0_17 = arith.constant 0 : index
    %35 = vector.load %arg3[%c0_16, %c0_17] : memref<2x256xf32, #tpu.memory_space<vmem>>, vector<2x128xf32>
    tpu.vector_store %arg3[%c0_16, %c0_17], %34 {strides = array<i32>} : memref<2x256xf32, #tpu.memory_space<vmem>>, vector<2x128xf32>,
    %36 = math.tanh %20 : vector<2x128xf32>
    %c0_18 = arith.constant 0 : index
    %c128 = arith.constant 128 : index
    %37 = vector.load %arg3[%c0_18, %c128] : memref<2x256xf32, #tpu.memory_space<vmem>>, vector<2x128xf32>
    tpu.vector_store %arg3[%c0_18, %c128], %36 {strides = array<i32>} : memref<2x256xf32, #tpu.memory_space<vmem>>, vector<2x128xf32>,
    return
  }
}

</mosaic_0001>

<bundles_post_ra>
// kernel: forward.1
= control target key start
LH: loop header
LB: loop body
LE: loop exit
PB: predicated region body
PF: predicated region fallthrough
CT: control target
= control target key end

     0   :  { %vm255_vm0 = vcmask 261120   ;;  %vm784_vm1 = vcmask 1041409   ;;  %vm1567_vm2 = vcmask 1041408   ;;  %s2515_s2 = inlined_call_operand.vmem [shape: bf16[672,384], index: 2, kind: input, shape index: {}]   ;;  %s2516_s0 = inlined_call_operand.vmem [shape: bf16[512,32], index: 0, kind: input, shape index: {}]   ;;  %s2517_s1 = inlined_call_operand.vmem [shape: f32[2,128], index: 1, kind: input, shape index: {}]   ;;  %s2518_s3 = inlined_call_operand.vmem [shape: f32[2,256], index: 3, kind: output, shape index: {}]  }
   0x1   :  { %v1883_v0 = vld [vmem:[%s2515_s2 + $0x18] ss:$12 sps:$4 sm:$0xff]   ;;  %v1884_v1 = vld [vmem:[%s2515_s2] ss:$12 sps:$4 sm:$0xff]   ;;  %v1887_v4 = vld [vmem:[%s2516_s0 + $0x10] sm:$0xff]  }
   0x2   :  { %1812 = vmatprep.subr.bf16.mxu0 %v1883_v0  ;;  %v1885_v2 = vld [vmem:[%s2516_s0] sm:$0xff]   ;;  %v1886_v3 = vld [vmem:[%s2516_s0 + $0x8] sm:$0xff]   ;;  %v1888_v5 = vld [vmem:[%s2516_s0 + $0x18] sm:$0xff]  }
   0x3   :  { %1813 = vmatpush3.bf16.msra.mxu0 %v1883_v0  ;;  %1816 = vmatprep.mubr.msk.bf16.mxu0 %vm255_vm0, %v1885_v2  ;;  %v1889_v6 = vld [vmem:[%s2516_s0 + $0x20] sm:$0xff]   ;;  %v1890_v7 = vld [vmem:[%s2516_s0 + $0x28] sm:$0xff]   ;;  %v1891_v8 = vld [vmem:[%s2516_s0 + $0x30] sm:$0xff]  }
   0x4   :  { %1814 = vmatprep.subr.bf16.mxu0 %v1884_v1  ;;  %v1892_v9 = vld [vmem:[%s2516_s0 + $0x38] sm:$0xff]   ;;  %v1893_v10 = vld [vmem:[%s2516_s0 + $0x40] sm:$0xff]   ;;  %v1894_v11 = vld [vmem:[%s2516_s0 + $0x48] sm:$0xff]  }
   0x5   :  { %v1895_v12 = vld [vmem:[%s2516_s0 + $0x50] sm:$0xff]   ;;  %v1896_v13 = vld [vmem:[%s2516_s0 + $0x58] sm:$0xff]   ;;  %v1897_v14 = vld [vmem:[%s2516_s0 + $0x60] sm:$0xff]  }
   0x6   :  { %v1898_v15 = vld [vmem:[%s2516_s0 + $0x68] sm:$0xff]   ;;  %v1899_v16 = vld [vmem:[%s2516_s0 + $0x70] sm:$0xff]   ;;  %v1900_v17 = vld [vmem:[%s2516_s0 + $0x78] sm:$0xff]  }
   0x7   :  { %1815 = vmatpush3.bf16.msra.mxu0 %v1884_v1  ;;  %v1901_v18 = vld [vmem:[%s2516_s0 + $0x80] sm:$0xff]   ;;  %v1902_v19 = vld [vmem:[%s2516_s0 + $0x88] sm:$0xff]   ;;  %v1903_v20 = vld [vmem:[%s2516_s0 + $0x90] sm:$0xff]  }
   0x8   :  { %v1904_v21 = vld [vmem:[%s2516_s0 + $0x98] sm:$0xff]   ;;  %v1905_v22 = vld [vmem:[%s2516_s0 + $0xa0] sm:$0xff]   ;;  %v1906_v23 = vld [vmem:[%s2516_s0 + $0xa8] sm:$0xff]  }
   0x9   :  { %v1907_v24 = vld [vmem:[%s2516_s0 + $0xb0] sm:$0xff]   ;;  %v1908_v25 = vld [vmem:[%s2516_s0 + $0xb8] sm:$0xff]   ;;  %v1909_v26 = vld [vmem:[%s2516_s0 + $0xc0] sm:$0xff]  }
   0xa   :  { %1817 = vmatmul.mubr.msk.bf16.vlgmr.msra.gmra.mxu0 %vm255_vm0, %v1886_v3  ;;  %v1910_v27 = vld [vmem:[%s2516_s0 + $0xc8] sm:$0xff]   ;;  %v1911_v28 = vld [vmem:[%s2516_s0 + $0xd0] sm:$0xff]   ;;  %v1912_v29 = vld [vmem:[%s2516_s0 + $0xd8] sm:$0xff]  }
   0xb   :  { %1820 = vmatprep.mubr.msk.bf16.mxu0 %vm255_vm0, %v1887_v4  ;;  %v1913_v30 = vld [vmem:[%s2516_s0 + $0xe0] sm:$0xff]   ;;  %v1914_v31 = vld [vmem:[%s2516_s0 + $0xe8] sm:$0xff]   ;;  %v1915_v32 = vld [vmem:[%s2516_s0 + $0xf0] sm:$0xff]  }
   0xc   :  { %v1916_v33 = vld [vmem:[%s2516_s0 + $0xf8] sm:$0xff]   ;;  %v1920_v36 = vld [vmem:[%s2515_s2 + $0xc4] ss:$12 sps:$4 sm:$0xff]   ;;  %v1922_v37 = vld [vmem:[%s2515_s2 + $0xc0] ss:$12 sps:$4 sm:$0xff]  }
   0xd   :  { %v1917_v34 = vld [vmem:[%s2515_s2 + $0xdc] ss:$12 sps:$4 sm:$0xff]   ;;  %v1919_v35 = vld [vmem:[%s2515_s2 + $0xd8] ss:$12 sps:$4 sm:$0xff]   ;;  %v1926_v40 = vld [vmem:[%s2515_s2 + $0x94] ss:$12 sps:$4 sm:$0xff]  }
   0xe   :  { %1109 = vmatprep.subr.bf16.mxu1 %v1917_v34  ;;  %v1923_v38 = vld [vmem:[%s2515_s2 + $0xac] ss:$12 sps:$4 sm:$0xff]   ;;  %v1925_v39 = vld [vmem:[%s2515_s2 + $0xa8] ss:$12 sps:$4 sm:$0xff]   ;;  %v1928_v41 = vld [vmem:[%s2515_s2 + $0x90] ss:$12 sps:$4 sm:$0xff]  }
   0xf   :  { %1110 = vmatpush1.bf16.msra.mxu1 %v1919_v35  ;;  %v1929_v42 = vld [vmem:[%s2515_s2 + $0x7c] ss:$12 sps:$4 sm:$0xff]   ;;  %v1931_v43 = vld [vmem:[%s2515_s2 + $0x78] ss:$12 sps:$4 sm:$0xff]   ;;  %v1934_v45 = vld [vmem:[%s2515_s2 + $0x60] ss:$12 sps:$4 sm:$0xff]  }
  0x10   :  { %1111 = vmatprep.subr.bf16.mxu1 %v1920_v36  ;;  %v1932_v44 = vld [vmem:[%s2515_s2 + $0x64] ss:$12 sps:$4 sm:$0xff]   ;;  %v1935_v46 = vld [vmem:[%s2515_s2 + $0x4c] ss:$12 sps:$4 sm:$0xff]   ;;  %v1937_v47 = vld [vmem:[%s2515_s2 + $0x48] ss:$12 sps:$4 sm:$0xff]  }
  0x11   :  { %v1938_v48 = vld [vmem:[%s2515_s2 + $0x34] ss:$12 sps:$4 sm:$0xff]   ;;  %v1940_v49 = vld [vmem:[%s2515_s2 + $0x30] ss:$12 sps:$4 sm:$0xff]   ;;  %v1943_v51 = vld [vmem:[%s2515_s2 + $0x198] ss:$12 sps:$4 sm:$0xff]  }
  0x12   :  { %1821 = vmatmul.mubr.msk.bf16.gmra.mxu0 %vm255_vm0, %v1888_v5  ;;  %v1941_v50 = vld [vmem:[%s2515_s2 + $0x19c] ss:$12 sps:$4 sm:$0xff]   ;;  %v1944_v52 = vld [vmem:[%s2515_s2 + $0x184] ss:$12 sps:$4 sm:$0xff]   ;;  %v1946_v53 = vld [vmem:[%s2515_s2 + $0x180] ss:$12 sps:$4 sm:$0xff]  }
  0x13   :  { %1824 = vmatprep.mubr.msk.bf16.mxu0 %vm255_vm0, %v1889_v6  ;;  %1112 = vmatpush1.bf16.msra.mxu1 %v1922_v37  ;;  %v1947_v54 = vld [vmem:[%s2515_s2 + $0x16c] ss:$12 sps:$4 sm:$0xff]   ;;  %v1949_v55 = vld [vmem:[%s2515_s2 + $0x168] ss:$12 sps:$4 sm:$0xff]   ;;  %v1952_v59 = vld [vmem:[%s2515_s2 + $0x150] ss:$12 sps:$4 sm:$0xff]  }
  0x14   :  { %1113 = vmatprep.subr.bf16.mxu1 %v1923_v38  ;;  %v1950_v57 = vld [vmem:[%s2515_s2 + $0x154] ss:$12 sps:$4 sm:$0xff]   ;;  %v1953_v61 = vld [vmem:[%s2515_s2 + $0x13c] ss:$12 sps:$4 sm:$0xff]   ;;  %v1955_v63 = vld [vmem:[%s2515_s2 + $0x138] ss:$12 sps:$4 sm:$0xff]  }
  0x15   :  { %v1956_v5 = vld [vmem:[%s2515_s2 + $0x124] ss:$12 sps:$4 sm:$0xff]  }
  0x17   :  { %1114 = vmatpush1.bf16.msra.mxu1 %v1925_v39 }
  0x18   :  { %1115 = vmatprep.subr.bf16.mxu1 %v1926_v40 }
  0x1a   :  { %1825 = vmatmul.mubr.msk.bf16.gmra.mxu0 %vm255_vm0, %v1890_v7  ;;  %v1958_v7 = vld [vmem:[%s2515_s2 + $0x120] ss:$12 sps:$4 sm:$0xff]  }
  0x1b   :  { %1828 = vmatprep.mubr.msk.bf16.mxu0 %vm255_vm0, %v1891_v8  ;;  %1116 = vmatpush1.bf16.msra.mxu1 %v1928_v41 }
  0x1c   :  { %1117 = vmatprep.subr.bf16.mxu1 %v1929_v42 }
  0x1f   :  { %1118 = vmatpush1.bf16.msra.mxu1 %v1931_v43 }
  0x20   :  { %1119 = vmatprep.subr.bf16.mxu1 %v1932_v44 }
  0x22   :  { %1829 = vmatmul.mubr.msk.bf16.gmra.mxu0 %vm255_vm0, %v1892_v9 }
  0x23   :  { %1832 = vmatprep.mubr.msk.bf16.mxu0 %vm255_vm0, %v1893_v10  ;;  %1120 = vmatpush1.bf16.msra.mxu1 %v1934_v45 }
  0x24   :  { %1121 = vmatprep.subr.bf16.mxu1 %v1935_v46 }
  0x27   :  { %1122 = vmatpush1.bf16.msra.mxu1 %v1937_v47 }
  0x28   :  { %1123 = vmatprep.subr.bf16.mxu1 %v1938_v48 }
  0x2a   :  { %1833 = vmatmul.mubr.msk.bf16.gmra.mxu0 %vm255_vm0, %v1894_v11 }
  0x2b   :  { %1836 = vmatprep.mubr.msk.bf16.mxu0 %vm255_vm0, %v1895_v12  ;;  %1124 = vmatpush1.bf16.msra.mxu1 %v1940_v49 }
  0x2c   :  { %1125 = vmatprep.subr.bf16.mxu1 %v1941_v50 }
  0x2f   :  { %1126 = vmatpush2.bf16.msra.mxu1 %v1943_v51 }
  0x30   :  { %1127 = vmatprep.subr.bf16.mxu1 %v1944_v52 }
  0x32   :  { %1837 = vmatmul.mubr.msk.bf16.gmra.mxu0 %vm255_vm0, %v1896_v13  ;;  %v1959_v13 = vld [vmem:[%s2515_s2 + $0x10c] ss:$12 sps:$4 sm:$0xff]  }
  0x33   :  { %1840 = vmatprep.mubr.msk.bf16.mxu0 %vm255_vm0, %v1897_v14  ;;  %1128 = vmatpush2.bf16.msra.mxu1 %v1946_v53  ;;  %v1961_v14 = vld [vmem:[%s2515_s2 + $0x108] ss:$12 sps:$4 sm:$0xff]  }
  0x34   :  { %1129 = vmatprep.subr.bf16.mxu1 %v1947_v54 }
  0x37   :  { %1130 = vmatpush2.bf16.msra.mxu1 %v1949_v55 }
  0x38   :  { %1131 = vmatprep.subr.bf16.mxu1 %v1950_v57 }
  0x3a   :  { %1841 = vmatmul.mubr.msk.bf16.gmra.mxu0 %vm255_vm0, %v1898_v15 }
  0x3b   :  { %1844 = vmatprep.mubr.msk.bf16.mxu0 %vm255_vm0, %v1899_v16  ;;  %1132 = vmatpush2.bf16.msra.mxu1 %v1952_v59  ;;  %v1962_v16 = vld [vmem:[%s2515_s2 + $0xf4] ss:$12 sps:$4 sm:$0xff]  }
  0x3c   :  { %1133 = vmatprep.subr.bf16.mxu1 %v1953_v61 }
  0x3f   :  { %1134 = vmatpush2.bf16.msra.mxu1 %v1955_v63 }
  0x40   :  { %1135 = vmatprep.subr.bf16.mxu1 %v1956_v5 }
  0x42   :  { %1845 = vmatmul.mubr.msk.bf16.gmra.mxu0 %vm255_vm0, %v1900_v17  ;;  %v781_v17 = vld [vmem:[%s2517_s1] sm:$0x3] }
  0x43   :  { %1848 = vmatprep.mubr.msk.bf16.mxu0 %vm255_vm0, %v1901_v18  ;;  %1136 = vmatpush2.bf16.msra.mxu1 %v1958_v7 }
  0x44   :  { %1137 = vmatprep.subr.bf16.mxu1 %v1959_v13 }
  0x47   :  { %1138 = vmatpush2.bf16.msra.mxu1 %v1961_v14 }
  0x48   :  { %1139 = vmatprep.subr.bf16.mxu1 %v1962_v16 }
  0x4a   :  { %1849 = vmatmul.mubr.msk.bf16.gmra.mxu0 %vm255_vm0, %v1902_v19 }
  0x4b   :  { %1852 = vmatprep.mubr.msk.bf16.mxu0 %vm255_vm0, %v1903_v20  ;;  %v2306_v20 = vpack.c.bf16 %v781_v17, %v781_v17 }
  0x4d   :  { %1141 = vmatprep.mubr.bf16.mxu1 %v2306_v20 }
  0x52   :  { %1853 = vmatmul.mubr.msk.bf16.gmra.mxu0 %vm255_vm0, %v1904_v21 }
  0x53   :  { %1856 = vmatprep.mubr.msk.bf16.mxu0 %vm255_vm0, %v1905_v22  ;;  %v1964_v22 = vld [vmem:[%s2515_s2 + $0xf0] ss:$12 sps:$4 sm:$0xff]  }
  0x54   :  { %1140 = vmatpush2.bf16.msra.mxu1 %v1964_v22  ;;  %v1983_v22 = vld [vmem:[%s2515_s2 + $0x25c] ss:$12 sps:$4 sm:$0xff]  }
  0x55   :  { %1484 = vmatprep.subr.bf16.mxu0 %v1983_v22 }
  0x5a   :  { %1857 = vmatmul.mubr.msk.bf16.gmra.mxu0 %vm255_vm0, %v1906_v23 }
  0x5b   :  { %1860 = vmatprep.mubr.msk.bf16.mxu0 %vm255_vm0, %v1907_v24 }
  0x62   :  { %1861 = vmatmul.mubr.msk.bf16.gmra.mxu0 %vm255_vm0, %v1908_v25  ;;  %v1965_v25 = vld [vmem:[%s2515_s2 + $0x1a0] ss:$12 sps:$4 sm:$0xff]  }
  0x63   :  { %1864 = vmatprep.mubr.msk.bf16.mxu0 %vm255_vm0, %v1909_v26  ;;  %1790 = vmatprep.subr.bf16.mxu1 %v1965_v25  ;;  %v1986_v25 = vld [vmem:[%s2515_s2 + $0x244] ss:$12 sps:$4 sm:$0xff]  }
  0x6a   :  { %1865 = vmatmul.mubr.msk.bf16.gmra.mxu0 %vm255_vm0, %v1910_v27 }
  0x6b   :  { %1868 = vmatprep.mubr.msk.bf16.mxu0 %vm255_vm0, %v1911_v28 }
  0x72   :  { %1869 = vmatmul.mubr.msk.bf16.gmra.mxu0 %vm255_vm0, %v1912_v29 }
  0x73   :  { %1872 = vmatprep.mubr.msk.bf16.mxu0 %vm255_vm0, %v1913_v30 }
  0x7a   :  { %1873 = vmatmul.mubr.msk.bf16.gmra.mxu0 %vm255_vm0, %v1914_v31 }
  0x7b   :  { %1876 = vmatprep.mubr.msk.bf16.mxu0 %vm255_vm0, %v1915_v32 }
  0x82   :  { %1877 = vmatmul.mubr.msk.bf16.gmra.mxu0 %vm255_vm0, %v1916_v33 }
  0xca   :  { %v1818_v56 = vpop.f32.mrf.mxu0 }
  0xcb   :  { %v643_v3 = vmax.f32 %v1818_v56, 0.0 }
  0xcc   :  { %v386_v58 = vpop.f32.mrf.mxu0 }
  0xcd   :  { %v641_v0 = vmax.f32 %v386_v58, 0.0 }
  0xce   :  { %v1819_v60 = vpop.f32.mrf.mxu0 }
  0xcf   :  { %v644_v8 = vmax.f32 %v1819_v60, 0.0 }
  0xd0   :  { %v389_v62 = vpop.f32.mrf.mxu0 }
  0xd1   :  { %v642_v1 = vmax.f32 %v389_v62, 0.0 }
  0xd2   :  { %v1822_v2 = vpop.f32.mrf.mxu0 }
  0xd3   :  { %v705_v4 = vadd.f32 %v642_v1, %v641_v0  ;;  %v647_v23 = vmax.f32 %v1822_v2, 0.0 }
  0xd4   :  { %v402_v6 = vpop.f32.mrf.mxu0 }
  0xd5   :  { %v706_v9 = vadd.f32 %v705_v4, %v643_v3  ;;  %v645_v11 = vmax.f32 %v402_v6, 0.0 }
  0xd6   :  { %v1823_v10 = vpop.f32.mrf.mxu0 }
  0xd7   :  { %v707_v12 = vadd.f32 %v706_v9, %v644_v8  ;;  %v648_v27 = vmax.f32 %v1823_v10, 0.0 }
  0xd8   :  { %v405_v15 = vpop.f32.mrf.mxu0 }
  0xd9   :  { %v708_v18 = vadd.f32 %v707_v12, %v645_v11  ;;  %v646_v19 = vmax.f32 %v405_v15, 0.0 }
  0xda   :  { %v1826_v21 = vpop.f32.mrf.mxu0 }
  0xdb   :  { %v709_v24 = vadd.f32 %v708_v18, %v646_v19  ;;  %v651_v36 = vmax.f32 %v1826_v21, 0.0  ;;  %v1981_v21 = vld [vmem:[%s2515_s2 + $0x258] ss:$12 sps:$4 sm:$0xff]  }
  0xdc   :  { %v418_v26 = vpop.f32.mrf.mxu0  ;;  %1485 = vmatpush1.bf16.msra.mxu0 %v1981_v21  ;;  %v2005_v21 = vld [vmem:[%s2515_s2 + $0x318] ss:$12 sps:$4 sm:$0xff]  }
  0xdd   :  { %v710_v28 = vadd.f32 %v709_v24, %v647_v23  ;;  %v649_v30 = vmax.f32 %v418_v26, 0.0  ;;  %1486 = vmatprep.subr.bf16.mxu0 %v1986_v25 }
  0xde   :  { %v1827_v29 = vpop.f32.mrf.mxu0 }
  0xdf   :  { %v711_v31 = vadd.f32 %v710_v28, %v648_v27  ;;  %v652_v39 = vmax.f32 %v1827_v29, 0.0  ;;  %v1984_v29 = vld [vmem:[%s2515_s2 + $0x240] ss:$12 sps:$4 sm:$0xff]  }
  0xe0   :  { %v421_v32 = vpop.f32.mrf.mxu0  ;;  %1487 = vmatpush1.bf16.msra.mxu0 %v1984_v29  ;;  %v2008_v29 = vld [vmem:[%s2515_s2 + $0x300] ss:$12 sps:$4 sm:$0xff]  }
  0xe1   :  { %v712_v33 = vadd.f32 %v711_v31, %v649_v30  ;;  %v650_v34 = vmax.f32 %v421_v32, 0.0  ;;  %v1989_v31 = vld [vmem:[%s2515_s2 + $0x22c] ss:$12 sps:$4 sm:$0xff]  }
  0xe2   :  { %v1830_v35 = vpop.f32.mrf.mxu0  ;;  %1488 = vmatprep.subr.bf16.mxu0 %v1989_v31  ;;  %v2013_v31 = vld [vmem:[%s2515_s2 + $0x2ec] ss:$12 sps:$4 sm:$0xff]  }
  0xe3   :  { %v713_v37 = vadd.f32 %v712_v33, %v650_v34  ;;  %v655_v48 = vmax.f32 %v1830_v35, 0.0 }
  0xe4   :  { %v434_v38 = vpop.f32.mrf.mxu0 }
  0xe5   :  { %v714_v40 = vadd.f32 %v713_v37, %v651_v36  ;;  %v653_v42 = vmax.f32 %v434_v38, 0.0  ;;  %v1987_v37 = vld [vmem:[%s2515_s2 + $0x228] ss:$12 sps:$4 sm:$0xff]  }
  0xe6   :  { %v1831_v41 = vpop.f32.mrf.mxu0  ;;  %1489 = vmatpush1.bf16.msra.mxu0 %v1987_v37  ;;  %v2011_v37 = vld [vmem:[%s2515_s2 + $0x2e8] ss:$12 sps:$4 sm:$0xff]  }
  0xe7   :  { %v715_v43 = vadd.f32 %v714_v40, %v652_v39  ;;  %v656_v51 = vmax.f32 %v1831_v41, 0.0  ;;  %v1992_v39 = vld [vmem:[%s2515_s2 + $0x214] ss:$12 sps:$4 sm:$0xff]  }
  0xe8   :  { %v437_v44 = vpop.f32.mrf.mxu0  ;;  %1490 = vmatprep.subr.bf16.mxu0 %v1992_v39  ;;  %v2016_v39 = vld [vmem:[%s2515_s2 + $0x2d4] ss:$12 sps:$4 sm:$0xff]  }
  0xe9   :  { %v716_v45 = vadd.f32 %v715_v43, %v653_v42  ;;  %v654_v46 = vmax.f32 %v437_v44, 0.0 }
  0xea   :  { %v1834_v47 = vpop.f32.mrf.mxu0 }
  0xeb   :  { %v717_v49 = vadd.f32 %v716_v45, %v654_v46  ;;  %v659_v60 = vmax.f32 %v1834_v47, 0.0  ;;  %v1990_v45 = vld [vmem:[%s2515_s2 + $0x210] ss:$12 sps:$4 sm:$0xff]  }
  0xec   :  { %v450_v50 = vpop.f32.mrf.mxu0  ;;  %v1995_v47 = vld [vmem:[%s2515_s2 + $0x1fc] ss:$12 sps:$4 sm:$0xff]   ;;  %1491 = vmatpush1.bf16.msra.mxu0 %v1990_v45 }
  0xed   :  { %v718_v52 = vadd.f32 %v717_v49, %v655_v48  ;;  %v657_v54 = vmax.f32 %v450_v50, 0.0  ;;  %1492 = vmatprep.subr.bf16.mxu0 %v1995_v47  ;;  %v2014_v45 = vld [vmem:[%s2515_s2 + $0x2d0] ss:$12 sps:$4 sm:$0xff]  }
  0xee   :  { %v1835_v53 = vpop.f32.mrf.mxu0  ;;  %v2019_v47 = vld [vmem:[%s2515_s2 + $0x2bc] ss:$12 sps:$4 sm:$0xff]  }
  0xef   :  { %v719_v55 = vadd.f32 %v718_v52, %v656_v51  ;;  %v660_v63 = vmax.f32 %v1835_v53, 0.0  ;;  %v1993_v52 = vld [vmem:[%s2515_s2 + $0x1f8] ss:$12 sps:$4 sm:$0xff]  }
  0xf0   :  { %v453_v56 = vpop.f32.mrf.mxu0  ;;  %1493 = vmatpush1.bf16.msra.mxu0 %v1993_v52 }
  0xf1   :  { %v720_v57 = vadd.f32 %v719_v55, %v657_v54  ;;  %v658_v58 = vmax.f32 %v453_v56, 0.0  ;;  %v1998_v54 = vld [vmem:[%s2515_s2 + $0x1e4] ss:$12 sps:$4 sm:$0xff]  }
  0xf2   :  { %v1838_v59 = vpop.f32.mrf.mxu0  ;;  %1494 = vmatprep.subr.bf16.mxu0 %v1998_v54  ;;  %v2017_v54 = vld [vmem:[%s2515_s2 + $0x2b8] ss:$12 sps:$4 sm:$0xff]  }
  0xf3   :  { %v721_v61 = vadd.f32 %v720_v57, %v658_v58  ;;  %v663_v8 = vmax.f32 %v1838_v59, 0.0 }
  0xf4   :  { %v466_v62 = vpop.f32.mrf.mxu0 }
  0xf5   :  { %v722_v0 = vadd.f32 %v721_v61, %v659_v60  ;;  %v661_v2 = vmax.f32 %v466_v62, 0.0  ;;  %v1996_v60 = vld [vmem:[%s2515_s2 + $0x1e0] ss:$12 sps:$4 sm:$0xff]  }
  0xf6   :  { %v1839_v1 = vpop.f32.mrf.mxu0  ;;  %v2001_v62 = vld [vmem:[%s2515_s2 + $0x1cc] ss:$12 sps:$4 sm:$0xff]   ;;  %1495 = vmatpush1.bf16.msra.mxu0 %v1996_v60 }
  0xf7   :  { %v723_v3 = vadd.f32 %v722_v0, %v660_v63  ;;  %v664_v11 = vmax.f32 %v1839_v1, 0.0  ;;  %1496 = vmatprep.subr.bf16.mxu0 %v2001_v62  ;;  %v2020_v62 = vld [vmem:[%s2515_s2 + $0x2a0] ss:$12 sps:$4 sm:$0xff]  }
  0xf8   :  { %v469_v4 = vpop.f32.mrf.mxu0 }
  0xf9   :  { %v724_v5 = vadd.f32 %v723_v3, %v661_v2  ;;  %v662_v6 = vmax.f32 %v469_v4, 0.0  ;;  %v1999_v4 = vld [vmem:[%s2515_s2 + $0x1c8] ss:$12 sps:$4 sm:$0xff]  }
  0xfa   :  { %v1842_v7 = vpop.f32.mrf.mxu0  ;;  %1497 = vmatpush1.bf16.msra.mxu0 %v1999_v4 }
  0xfb   :  { %v725_v9 = vadd.f32 %v724_v5, %v662_v6  ;;  %v667_v23 = vmax.f32 %v1842_v7, 0.0  ;;  %v2004_v6 = vld [vmem:[%s2515_s2 + $0x1b4] ss:$12 sps:$4 sm:$0xff]  }
  0xfc   :  { %v482_v10 = vpop.f32.mrf.mxu0  ;;  %1498 = vmatprep.subr.bf16.mxu0 %v2004_v6 }
  0xfd   :  { %v726_v12 = vadd.f32 %v725_v9, %v663_v8  ;;  %v665_v14 = vmax.f32 %v482_v10, 0.0 }
  0xfe   :  { %v1843_v13 = vpop.f32.mrf.mxu0 }
  0xff   :  { %v727_v15 = vadd.f32 %v726_v12, %v664_v11  ;;  %v668_v27 = vmax.f32 %v1843_v13, 0.0  ;;  %v2002_v12 = vld [vmem:[%s2515_s2 + $0x1b0] ss:$12 sps:$4 sm:$0xff]  }
 0x100   :  { %v485_v16 = vpop.f32.mrf.mxu0  ;;  %1499 = vmatpush1.bf16.msra.mxu0 %v2002_v12 }
 0x101   :  { %v728_v17 = vadd.f32 %v727_v15, %v665_v14  ;;  %v666_v18 = vmax.f32 %v485_v16, 0.0  ;;  %v2007_v14 = vld [vmem:[%s2515_s2 + $0x31c] ss:$12 sps:$4 sm:$0xff]  }
 0x102   :  { %v1846_v19 = vpop.f32.mrf.mxu0  ;;  %1500 = vmatprep.subr.bf16.mxu0 %v2007_v14 }
 0x103   :  { %v729_v24 = vadd.f32 %v728_v17, %v666_v18  ;;  %v671_v40 = vmax.f32 %v1846_v19, 0.0 }
 0x104   :  { %v498_v26 = vpop.f32.mrf.mxu0  ;;  %1501 = vmatpush2.bf16.msra.mxu0 %v2005_v21 }
 0x105   :  { %v730_v28 = vadd.f32 %v729_v24, %v667_v23  ;;  %v669_v32 = vmax.f32 %v498_v26, 0.0  ;;  %v2010_v23 = vld [vmem:[%s2515_s2 + $0x304] ss:$12 sps:$4 sm:$0xff]  }
 0x106   :  { %v1847_v30 = vpop.f32.mrf.mxu0  ;;  %1502 = vmatprep.subr.bf16.mxu0 %v2010_v23 }
 0x107   :  { %v731_v33 = vadd.f32 %v730_v28, %v668_v27  ;;  %v672_v43 = vmax.f32 %v1847_v30, 0.0 }
 0x108   :  { %v501_v34 = vpop.f32.mrf.mxu0  ;;  %1503 = vmatpush2.bf16.msra.mxu0 %v2008_v29 }
 0x109   :  { %v732_v35 = vadd.f32 %v731_v33, %v669_v32  ;;  %v670_v36 = vmax.f32 %v501_v34, 0.0  ;;  %1504 = vmatprep.subr.bf16.mxu0 %v2013_v31 }
 0x10a   :  { %v1850_v38 = vpop.f32.mrf.mxu0 }
 0x10b   :  { %v733_v41 = vadd.f32 %v732_v35, %v670_v36  ;;  %v675_v55 = vmax.f32 %v1850_v38, 0.0 }
 0x10c   :  { %v514_v42 = vpop.f32.mrf.mxu0  ;;  %1505 = vmatpush2.bf16.msra.mxu0 %v2011_v37 }
 0x10d   :  { %v734_v44 = vadd.f32 %v733_v41, %v671_v40  ;;  %v673_v50 = vmax.f32 %v514_v42, 0.0  ;;  %1506 = vmatprep.subr.bf16.mxu0 %v2016_v39 }
 0x10e   :  { %v1851_v46 = vpop.f32.mrf.mxu0 }
 0x10f   :  { %v2342_v48 = vadd.f32 %v734_v44, %v672_v43  ;;  %v676_v58 = vmax.f32 %v1851_v46, 0.0 }
 0x110   :  { %v517_v49 = vpop.f32.mrf.mxu0  ;;  %1507 = vmatpush2.bf16.msra.mxu0 %v2014_v45 }
 0x111   :  { %v674_v51 = vmax.f32 %v517_v49, 0.0  ;;  %1508 = vmatprep.subr.bf16.mxu0 %v2019_v47 }
 0x112   :  { %v1854_v53 = vpop.f32.mrf.mxu0 }
 0x113   :  { %v742_v56 = vadd.f32 %v674_v51, %v673_v50  ;;  %v679_v7 = vmax.f32 %v1854_v53, 0.0 }
 0x114   :  { %v530_v57 = vpop.f32.mrf.mxu0  ;;  %1509 = vmatpush2.bf16.msra.mxu0 %v2017_v54  ;;  %v1969_v54 = vld [vmem:[%s2515_s2 + $0x170] ss:$12 sps:$4 sm:$0xff]  }
 0x115   :  { %v743_v59 = vadd.f32 %v742_v56, %v675_v55  ;;  %v677_v63 = vmax.f32 %v530_v57, 0.0  ;;  %v2022_v56 = vld [vmem:[%s2515_s2 + $0x2a4] ss:$12 sps:$4 sm:$0xff]  }
 0x116   :  { %v1855_v61 = vpop.f32.mrf.mxu0  ;;  %1510 = vmatprep.subr.bf16.mxu0 %v2022_v56  ;;  %v1971_v56 = vld [vmem:[%s2515_s2 + $0x158] ss:$12 sps:$4 sm:$0xff]  }
 0x117   :  { %v744_v0 = vadd.f32 %v743_v59, %v676_v58  ;;  %v680_v10 = vmax.f32 %v1855_v61, 0.0 }
 0x118   :  { %v533_v1 = vpop.f32.mrf.mxu0  ;;  %1511 = vmatpush2.bf16.msra.mxu0 %v2020_v62  ;;  %v1978_v62 = vld [vmem:[%s2515_s2 + $0x50] ss:$12 sps:$4 sm:$0xff]  }
 0x119   :  { %v745_v2 = vadd.f32 %v744_v0, %v677_v63  ;;  %v678_v3 = vmax.f32 %v533_v1, 0.0 }
 0x11a   :  { %v1858_v5 = vpop.f32.mrf.mxu0 }
 0x11b   :  { %v746_v8 = vadd.f32 %v745_v2, %v678_v3  ;;  %v683_v24 = vmax.f32 %v1858_v5, 0.0 }
 0x11c   :  { %v546_v9 = vpop.f32.mrf.mxu0 }
 0x11d   :  { %v747_v11 = vadd.f32 %v746_v8, %v679_v7  ;;  %v681_v15 = vmax.f32 %v546_v9, 0.0 }
 0x11e   :  { %v1859_v13 = vpop.f32.mrf.mxu0 }
 0x11f   :  { %v748_v16 = vadd.f32 %v747_v11, %v680_v10  ;;  %v684_v27 = vmax.f32 %v1859_v13, 0.0 }
 0x120   :  { %v549_v17 = vpop.f32.mrf.mxu0 }
 0x121   :  { %v749_v18 = vadd.f32 %v748_v16, %v681_v15  ;;  %v682_v19 = vmax.f32 %v549_v17, 0.0 }
 0x122   :  { %v1862_v22 = vpop.f32.mrf.mxu0 }
 0x123   :  { %v750_v25 = vadd.f32 %v749_v18, %v682_v19  ;;  %v687_v40 = vmax.f32 %v1862_v22, 0.0  ;;  %v736_v22 = vrot.slane %v2342_v48, 4 }
 0x124   :  { %v562_v26 = vpop.f32.mrf.mxu0 }
 0x125   :  { %v751_v28 = vadd.f32 %v750_v25, %v683_v24  ;;  %v685_v32 = vmax.f32 %v562_v26, 0.0  ;;  %v737_v29 = vadd.f32 %v736_v22, %v2342_v48  ;;  %v2055_v22 = vmov 0  }
 0x126   :  { %v1863_v30 = vpop.f32.mrf.mxu0 }
 0x127   :  { %v752_v33 = vadd.f32 %v751_v28, %v684_v27  ;;  %v688_v43 = vmax.f32 %v1863_v30, 0.0 }
 0x128   :  { %v565_v34 = vpop.f32.mrf.mxu0 }
 0x129   :  { %v753_v35 = vadd.f32 %v752_v33, %v685_v32  ;;  %v686_v36 = vmax.f32 %v565_v34, 0.0  ;;  %v738_v34 = vrot.slane %v737_v29, 2 }
 0x12a   :  { %v1866_v38 = vpop.f32.mrf.mxu0 }
 0x12b   :  { %v754_v41 = vadd.f32 %v753_v35, %v686_v36  ;;  %v691_v57 = vmax.f32 %v1866_v38, 0.0  ;;  %v739_v38 = vadd.f32 %v738_v34, %v737_v29 }
 0x12c   :  { %v578_v42 = vpop.f32.mrf.mxu0 }
 0x12d   :  { %v755_v44 = vadd.f32 %v754_v41, %v687_v40  ;;  %v689_v49 = vmax.f32 %v578_v42, 0.0  ;;  %v740_v42 = vrot.slane %v739_v38, 1 }
 0x12e   :  { %v1867_v46 = vpop.f32.mrf.mxu0 }
 0x12f   :  { %v756_v50 = vadd.f32 %v755_v44, %v688_v43  ;;  %v692_v60 = vmax.f32 %v1867_v46, 0.0  ;;  %v741_v44 = vadd.f32 %v740_v42, %v739_v38 }
 0x130   :  { %v581_v51 = vpop.f32.mrf.mxu0 }
 0x131   :  { %v757_v52 = vadd.f32 %v756_v50, %v689_v49  ;;  %v690_v53 = vmax.f32 %v581_v51, 0.0  ;;  %v779_v47 = vmul.f32 0.00390625, %v741_v44  ;;  %v1966_v50 = vld [vmem:[%s2515_s2 + $0xe0] ss:$12 sps:$4 sm:$0xff]  }
 0x132   :  { %v1870_v55 = vpop.f32.mrf.mxu0 }
 0x133   :  { %v758_v58 = vadd.f32 %v757_v52, %v690_v53  ;;  %v695_v6 = vmax.f32 %v1870_v55, 0.0  ;;  %v1967_v52 = vld [vmem:[%s2515_s2 + $0x188] ss:$12 sps:$4 sm:$0xff]   ;;  %v1970_v55 = vld [vmem:[%s2515_s2 + $0xb0] ss:$12 sps:$4 sm:$0xff]  }
 0x134   :  { %v594_v59 = vpop.f32.mrf.mxu0  ;;  %v1968_v53 = vld [vmem:[%s2515_s2 + $0xc8] ss:$12 sps:$4 sm:$0xff]  }
 0x135   :  { %v759_v61 = vadd.f32 %v758_v58, %v691_v57  ;;  %v693_v0 = vmax.f32 %v594_v59, 0.0  ;;  %v1973_v57 = vld [vmem:[%s2515_s2 + $0x140] ss:$12 sps:$4 sm:$0xff]   ;;  %v1975_v59 = vld [vmem:[%s2515_s2 + $0x128] ss:$12 sps:$4 sm:$0xff]  }
 0x136   :  { %v1871_v63 = vpop.f32.mrf.mxu0  ;;  %v1974_v58 = vld [vmem:[%s2515_s2 + $0x80] ss:$12 sps:$4 sm:$0xff]  }
 0x137   :  { %v760_v1 = vadd.f32 %v759_v61, %v692_v60  ;;  %v696_v9 = vmax.f32 %v1871_v63, 0.0  ;;  %v1976_v60 = vld [vmem:[%s2515_s2 + $0x68] ss:$12 sps:$4 sm:$0xff]   ;;  %v1977_v61 = vld [vmem:[%s2515_s2 + $0x110] ss:$12 sps:$4 sm:$0xff]  }
 0x138   :  { %v597_v2 = vpop.f32.mrf.mxu0  ;;  %v1979_v63 = vld [vmem:[%s2515_s2 + $0xf8] ss:$12 sps:$4 sm:$0xff]  }
 0x139   :  { %v761_v3 = vadd.f32 %v760_v1, %v693_v0  ;;  %v694_v4 = vmax.f32 %v597_v2, 0.0  ;;  %v1980_v0 = vld [vmem:[%s2515_s2 + $0x38] ss:$12 sps:$4 sm:$0xff]   ;;  %v2023_v2 = vld [vmem:[%s2515_s2 + $0x288] ss:$12 sps:$4 sm:$0xff]  }
 0x13a   :  { %v1874_v5 = vpop.f32.mrf.mxu0  ;;  %v2025_v1 = vld [vmem:[%s2515_s2 + $0x28c] ss:$12 sps:$4 sm:$0xff]  }
 0x13b   :  { %v762_v7 = vadd.f32 %v761_v3, %v694_v4  ;;  %v699_v18 = vmax.f32 %v1874_v5, 0.0  ;;  %1512 = vmatprep.subr.bf16.mxu0 %v2025_v1  ;;  %v2028_v3 = vld [vmem:[%s2515_s2 + $0x274] ss:$12 sps:$4 sm:$0xff]   ;;  %v2026_v4 = vld [vmem:[%s2515_s2 + $0x270] ss:$12 sps:$4 sm:$0xff]  }
 0x13c   :  { %v610_v8 = vpop.f32.mrf.mxu0  ;;  %1513 = vmatpush2.bf16.msra.mxu0 %v2023_v2  ;;  %v2031_v5 = vld [vmem:[%s2515_s2 + $0x3dc] ss:$12 sps:$4 sm:$0xff]  }
 0x13d   :  { %v763_v10 = vadd.f32 %v762_v7, %v695_v6  ;;  %v697_v12 = vmax.f32 %v610_v8, 0.0  ;;  %1514 = vmatprep.subr.bf16.mxu0 %v2028_v3  ;;  %v2029_v6 = vld [vmem:[%s2515_s2 + $0x3d8] ss:$12 sps:$4 sm:$0xff]   ;;  %v2032_v8 = vld [vmem:[%s2515_s2 + $0x3c0] ss:$12 sps:$4 sm:$0xff]  }
 0x13e   :  { %v1875_v11 = vpop.f32.mrf.mxu0  ;;  %v2034_v7 = vld [vmem:[%s2515_s2 + $0x3c4] ss:$12 sps:$4 sm:$0xff]  }
 0x13f   :  { %v764_v13 = vadd.f32 %v763_v10, %v696_v9  ;;  %v700_v23 = vmax.f32 %v1875_v11, 0.0  ;;  %v2037_v9 = vld [vmem:[%s2515_s2 + $0x3ac] ss:$12 sps:$4 sm:$0xff]   ;;  %v2035_v10 = vld [vmem:[%s2515_s2 + $0x3a8] ss:$12 sps:$4 sm:$0xff]  }
 0x140   :  { %v613_v14 = vpop.f32.mrf.mxu0  ;;  %1515 = vmatpush2.bf16.msra.mxu0 %v2026_v4  ;;  %v2040_v11 = vld [vmem:[%s2515_s2 + $0x394] ss:$12 sps:$4 sm:$0xff]  }
 0x141   :  { %v765_v15 = vadd.f32 %v764_v13, %v697_v12  ;;  %v698_v16 = vmax.f32 %v613_v14, 0.0  ;;  %v2038_v12 = vld [vmem:[%s2515_s2 + $0x390] ss:$12 sps:$4 sm:$0xff]   ;;  %v2041_v14 = vld [vmem:[%s2515_s2 + $0x378] ss:$12 sps:$4 sm:$0xff]  }
 0x142   :  { %v1878_v17 = vpop.f32.mrf.mxu0  ;;  %v2043_v13 = vld [vmem:[%s2515_s2 + $0x37c] ss:$12 sps:$4 sm:$0xff]  }
 0x143   :  { %v766_v19 = vadd.f32 %v765_v15, %v698_v16  ;;  %v703_v32 = vmax.f32 %v1878_v17, 0.0  ;;  %v2046_v15 = vld [vmem:[%s2515_s2 + $0x364] ss:$12 sps:$4 sm:$0xff]   ;;  %v2044_v16 = vld [vmem:[%s2515_s2 + $0x360] ss:$12 sps:$4 sm:$0xff]  }
 0x144   :  { %v626_v21 = vpop.f32.mrf.mxu0  ;;  %v2049_v17 = vld [vmem:[%s2515_s2 + $0x34c] ss:$12 sps:$4 sm:$0xff]  }
 0x145   :  { %v767_v24 = vadd.f32 %v766_v19, %v699_v18  ;;  %v701_v26 = vmax.f32 %v626_v21, 0.0  ;;  %v2047_v18 = vld [vmem:[%s2515_s2 + $0x348] ss:$12 sps:$4 sm:$0xff]   ;;  %v2050_v21 = vld [vmem:[%s2515_s2 + $0x330] ss:$12 sps:$4 sm:$0xff]  }
 0x146   :  { %v1879_v25 = vpop.f32.mrf.mxu0  ;;  %v2052_v19 = vld [vmem:[%s2515_s2 + $0x334] ss:$12 sps:$4 sm:$0xff]  }
 0x147   :  { %v768_v27 = vadd.f32 %v767_v24, %v700_v23  ;;  %v704_v35 = vmax.f32 %v1879_v25, 0.0 }
 0x148   :  { %v629_v28 = vpop.f32.mrf.mxu0 }
 0x149   :  { %v769_v30 = vadd.f32 %v768_v27, %v701_v26  ;;  %v702_v31 = vmax.f32 %v629_v28, 0.0 }
 0x14b   :  { %v770_v33 = vadd.f32 %v769_v30, %v702_v31 }
 0x14d   :  { %v771_v36 = vadd.f32 %v770_v33, %v703_v32 }
 0x14f   :  { %v772_v37 = vadd.f32 %v771_v36, %v704_v35 }
 0x151   :  { %v773_v39 = vrot.slane %v772_v37, 4 }
 0x153   :  { %v774_v40 = vadd.f32 %v773_v39, %v772_v37 }
 0x155   :  { %v775_v41 = vrot.slane %v774_v40, 2 }
 0x157   :  { %v776_v43 = vadd.f32 %v775_v41, %v774_v40 }
 0x159   :  { %v777_v45 = vrot.slane %v776_v43, 1 }
 0x15b   :  { %v778_v46 = vadd.f32 %v777_v45, %v776_v43 }
 0x15d   :  { %v780_v48 = vmul.f32 0.00390625, %v778_v46 }
 0x15f   :  { %v785_v49 = vsel %vm784_vm1, %v780_v48, %v779_v47 }
 0x160   :  { %v787_v51 = vpack.c.bf16 %v785_v49, %v785_v49 }
 0x162   :  { %1142 = vmatmul.mubr.bf16.vlgmr.msra.gmra.mxu1 %v787_v51 }
 0x163   :  { %1791 = vmatpush3.bf16.msra.mxu1 %v1966_v50  ;;  %1182 = vmatprep.mubr.bf16.mxu1 %v2306_v20  ;;  %v1972_v20 = vld [vmem:[%s2515_s2 + $0x98] ss:$12 sps:$4 sm:$0xff]  }
 0x164   :  { %1792 = vmatprep.subr.bf16.mxu1 %v1967_v52 }
 0x167   :  { %1793 = vmatpush3.bf16.msra.mxu1 %v1968_v53 }
 0x168   :  { %1794 = vmatprep.subr.bf16.mxu1 %v1969_v54 }
 0x16b   :  { %1795 = vmatpush3.bf16.msra.mxu1 %v1970_v55 }
 0x16c   :  { %1796 = vmatprep.subr.bf16.mxu1 %v1971_v56 }
 0x16f   :  { %1797 = vmatpush3.bf16.msra.mxu1 %v1972_v20 }
 0x170   :  { %1798 = vmatprep.subr.bf16.mxu1 %v1973_v57  ;;  %v1582_v57 = vlaneseq }
 0x173   :  { %1799 = vmatpush3.bf16.msra.mxu1 %v1974_v58  ;;  %v1583_v58 = vand.u32 127, %v1582_v57 }
 0x174   :  { %1800 = vmatprep.subr.bf16.mxu1 %v1975_v59 }
 0x175   :  { %vm1584_vm3 = vcmp.eq.s32.totalorder %v1583_v58, 127 }
 0x177   :  { %1801 = vmatpush3.bf16.msra.mxu1 %v1976_v60 }
 0x178   :  { %1802 = vmatprep.subr.bf16.mxu1 %v1977_v61 }
 0x17b   :  { %1803 = vmatpush3.bf16.msra.mxu1 %v1978_v62 }
 0x17c   :  { %1804 = vmatprep.subr.bf16.mxu1 %v1979_v63 }
 0x17f   :  { %1805 = vmatpush3.bf16.msra.mxu1 %v1980_v0 }
 0x180   :  { %1525 = vmatprep.subr.bf16.mxu1 %v2031_v5 }
 0x182   :  { %1183 = vmatmul.mubr.bf16.vlgmr.msra.gmra.mxu1 %v787_v51 }
 0x183   :  { %1526 = vmatpush1.bf16.msra.mxu1 %v2029_v6  ;;  %1557 = vmatprep.mubr.bf16.mxu1 %v2055_v22 }
 0x184   :  { %1527 = vmatprep.subr.bf16.mxu1 %v2034_v7 }
 0x187   :  { %1528 = vmatpush1.bf16.msra.mxu1 %v2032_v8 }
 0x188   :  { %1529 = vmatprep.subr.bf16.mxu1 %v2037_v9 }
 0x18b   :  { %1530 = vmatpush1.bf16.msra.mxu1 %v2035_v10 }
 0x18c   :  { %1531 = vmatprep.subr.bf16.mxu1 %v2040_v11 }
 0x18f   :  { %1532 = vmatpush1.bf16.msra.mxu1 %v2038_v12 }
 0x190   :  { %1533 = vmatprep.subr.bf16.mxu1 %v2043_v13 }
 0x193   :  { %1534 = vmatpush1.bf16.msra.mxu1 %v2041_v14 }
 0x194   :  { %1535 = vmatprep.subr.bf16.mxu1 %v2046_v15 }
 0x197   :  { %1536 = vmatpush1.bf16.msra.mxu1 %v2044_v16 }
 0x198   :  { %1537 = vmatprep.subr.bf16.mxu1 %v2049_v17 }
 0x19b   :  { %1538 = vmatpush1.bf16.msra.mxu1 %v2047_v18 }
 0x19c   :  { %1539 = vmatprep.subr.bf16.mxu1 %v2052_v19 }
 0x19f   :  { %1540 = vmatpush1.bf16.msra.mxu1 %v2050_v21 }
 0x222   :  { %v1143_v23 = vpop.f32.mrf.mxu1 }
 0x223   :  { %v1190_v24 = vmax.f32 %v1143_v23, 0.0 }
 0x224   :  { %v1145_v25 = vpop.f32.mrf.mxu1 }
 0x225   :  { %v1191_v26 = vmax.f32 %v1145_v25, 0.0  ;;  %v1241_v29 = vpack.c.bf16 %v1190_v24, %v1190_v24 }
 0x226   :  { %v1147_v27 = vpop.f32.mrf.mxu1 }
 0x227   :  { %v1242_v28 = vpack.c.bf16 %v1191_v26, %v1191_v26 }
 0x228   :  { %v1148_v30 = vpop.f32.mrf.mxu1 }
 0x229   :  { %1516 = vmatprep.mubr.bf16.mxu0 %v1242_v28 }
 0x22a   :  { %1517 = vmatmul.mubr.bf16.vlgmr.msra.gmra.mxu0 %v1241_v29 }
 0x242   :  { %v1806_v31 = vpop.f32.mrf.mxu1 }
 0x244   :  { %v1807_v32 = vpop.f32.mrf.mxu1 }
 0x245   :  { %v1808_v33 = vadd.f32 %v1807_v32, %v1806_v31 }
 0x246   :  { %v1809_v34 = vpop.f32.mrf.mxu1 }
 0x247   :  { %v1192_v35 = vmax.f32 %v1808_v33, 0.0 }
 0x248   :  { %v1810_v36 = vpop.f32.mrf.mxu1 }
 0x249   :  { %v1243_v37 = vpack.c.bf16 %v1192_v35, %v1192_v35 }
 0x24b   :  { %1558 = vmatmul.mubr.bf16.vlgmr.msra.gmra.mxu1 %v1243_v37 }
 0x2ea   :  { %v1518_v38 = vpop.f32.mrf.mxu0 }
 0x2ec   :  { %v1520_v39 = vpop.f32.mrf.mxu0 }
 0x2ee   :  { %v1522_v40 = vpop.f32.mrf.mxu0 }
 0x2f0   :  { %v1523_v41 = vpop.f32.mrf.mxu0 }
 0x30b   :  { %v1559_v42 = vpop.f32.mrf.mxu1 }
 0x30c   :  { %v1560_v43 = vadd.f32 %v1559_v42, %v1518_v38 }
 0x30d   :  { %v1561_v44 = vpop.f32.mrf.mxu1 }
 0x30e   :  { %v1562_v45 = vadd.f32 %v1561_v44, %v1520_v39  ;;  %v1566_v46 = vmul.f32 %v1560_v43, %v1560_v43 }
 0x30f   :  { %v1563_v47 = vpop.f32.mrf.mxu1 }
 0x310   :  { %2053 = vtanh.f32 %v1562_v45  ;;  %v1568_v48 = vsel %vm1567_vm2, %v1566_v46, 0.0 }
 0x311   :  { %v1564_v49 = vpop.f32.mrf.mxu1  ;;  %1569 = vadd.xlane.f32.xlu0 %v1568_v48 }
 0x31d   :  { %v2054_v50 = vpop.eup %2053 }
 0x31e   :  { %1589 = vst [vmem:[%s2518_s3 + $0x2] sm:$0x3] %v2054_v50 }
 0x39a   :  { %v1570_v51 = vpop.xlane.xlu0 %1569 }
 0x39b   :  { %v1571_v52 = vrot.slane %v1570_v51, 4 }
 0x39d   :  { %v1572_v53 = vadd.f32 %v1571_v52, %v1570_v51 }
 0x39f   :  { %v1573_v54 = vrot.slane %v1572_v53, 2 }
 0x3a1   :  { %v1574_v55 = vadd.f32 %v1573_v54, %v1572_v53 }
 0x3a3   :  { %v1575_v56 = vrot.slane %v1574_v55, 1 }
 0x3a5   :  { %v1576_v20 = vadd.f32 %v1575_v56, %v1574_v55 }
 0x3a7   :  { %1880 = vpush %v1576_v20 }
 0x3d8   :  { %s1881_s20 = spop %1880 }
 0x3d9   :  { %s1578_s21 = smul.f32 0.04927274, %s1881_s20 }
 0x3db   :  { %s1579_s22 = smul.f32 0.083333336, %s1578_s21  ;;  %v1585_v61 = vstv %s1578_s21 }
 0x3dd   :  { %v1580_v59 = vstv %s1579_s22 }
 0x3de   :  { %v1581_v60 = vsub.f32 %v1560_v43, %v1580_v59 }
 0x3e0   :  { %v1586_v62 = vsel %vm1584_vm3, %v1585_v61, %v1581_v60 }
 0x3e1   :  { %1587 = vst [vmem:[%s2518_s3] sm:$0x3] %v1586_v62 }

</bundles_post_ra>
